<compile_context>
chip_gen: v5e
topology: v5e:2x2
jax: 0.10.0
libtpu: 0.0.40
codegen_flags: <defaults>
</compile_context>

<pallas_src>
import jax
import jax.numpy as jnp
from jax.experimental import pallas as pl
from jax.experimental.pallas import tpu as pltpu


def _copy_kernel(x_ref, o_ref):
    # (TR, TL) tile, identity copy over the output extent only.
    o_ref[...] = x_ref[...]


def _slice_kernel(x_ref, o_ref):
    # x_ref is (TR, W), o_ref is (TR, L_out) with L_out <= W; static slice.
    o_ref[...] = x_ref[:, : o_ref.shape[-1]]


def _sublane_multiple(dtype) -> int:
    # Sub-32-bit dtypes pack along sublanes: f32 -> 8, bf16 -> 16, int8 -> 32.
    itemsize = jnp.dtype(dtype).itemsize
    return max(8, 32 // max(1, itemsize))


def _block_byte_budget() -> int:
    # Per-block byte budget. With in+out double buffering the footprint is
    # ~4x this: 4 MiB blocks -> ~16 MiB (fine for v6e/v7x 32 MiB default
    # scoped VMEM); 2 MiB blocks -> ~8 MiB (safe for v5e's 16 MiB default).
    try:
        kind = jax.devices()[0].device_kind.lower()
    except Exception:
        kind = ""
    if (not kind) or any(tag in kind for tag in ("v2", "v3", "v4", "v5")):
        return 2 << 20
    return 4 << 20


def chomp1d(x: jax.Array, chomp_size: int) -> jax.Array:
    """Pallas equivalent of Chomp1d(chomp_size)(x) for x of shape (N, C, L)."""
    n, c, l = x.shape

    if chomp_size == 0:
        # Faithful to PyTorch: x[:, :, :-0] == x[:, :, :0] -> empty time axis.
        return x[:, :, :0]
    assert 0 < chomp_size < l, "chomp_size must be in (0, L)"
    l_out = l - chomp_size

    r = n * c
    itemsize = jnp.dtype(x.dtype).itemsize
    sub = _sublane_multiple(x.dtype)
    budget = _block_byte_budget()
    x2 = x.reshape(r, l)  # collapse batch+channel onto the sublane axis

    def _rows(cap_rows: int, cap_bytes_per_row: int) -> int:
        # Round the row tile to the dtype's sublane multiple, capped by the
        # row count, an absolute cap, and the per-block byte budget.
        if r < sub:
            return r
        by_budget = max(sub, ((budget // max(1, cap_bytes_per_row)) // sub) * sub)
        return max(sub, min(cap_rows, (r // sub) * sub, by_budget))

    if l_out >= 128:
        # ---- candidate: full-row single-axis grid (contiguous writeback) ----
        row_bytes = (l + l_out) * itemsize
        # footprint 2*(tr*l + tr*l_out)*itemsize <= 4*budget  <=>  tr <= cap
        tr_full_cap = (2 * budget) // row_bytes
        min_rows = r if r < sub else sub
        use_full_row = (chomp_size * 8 <= l) and (tr_full_cap >= min_rows)

        if use_full_row:
            tr = _rows(512, row_bytes // 2)  # half budget each for in/out block
            # Feed both v7x TensorCores: don't collapse to a single grid step
            # when the row axis is splittable.
            if r <= tr and r >= 2 * sub:
                tr = max(sub, ((r // 2) // sub) * sub)
            grid = (pl.cdiv(r, tr),)
            in_specs = [pl.BlockSpec((tr, l), lambda i: (i, 0))]
            out_specs = pl.BlockSpec((tr, l_out), lambda i: (i, 0))
            kernel = _slice_kernel
            sem = ("parallel",)
            bytes_accessed = r * (l + l_out) * itemsize
        else:
            # ---- tiled (rows, time) path over the output extent only ----
            tl = min(2048, (l_out // 128) * 128)
            tr = _rows(512, tl * itemsize)
            # Avoid a (1, 1) grid on a splittable row axis (v7x megacore).
            if r <= tr and l_out <= tl and r >= 2 * sub:
                tr = max(sub, ((r // 2) // sub) * sub)
            grid = (pl.cdiv(r, tr), pl.cdiv(l_out, tl))
            in_specs = [pl.BlockSpec((tr, tl), lambda i, t: (i, t))]
            out_specs = pl.BlockSpec((tr, tl), lambda i, t: (i, t))
            kernel = _copy_kernel
            sem = ("parallel", "parallel")
            bytes_accessed = 2 * r * l_out * itemsize
    else:
        # ---- small time axis (L_out < 128) ----
        # Bound the input read at 128 lanes so a large chomped tail is never
        # DMA'd; output block width equals the full (legal) output extent.
        in_w = 128 if l >= 128 else l
        tr = _rows(512, in_w * itemsize)
        grid = (pl.cdiv(r, tr),)
        in_specs = [pl.BlockSpec((tr, in_w), lambda i: (i, 0))]
        out_specs = pl.BlockSpec((tr, l_out), lambda i: (i, 0))
        kernel = _slice_kernel
        sem = ("parallel",)
        bytes_accessed = r * (in_w + l_out) * itemsize

    out2 = pl.pallas_call(
        kernel,
        out_shape=jax.ShapeDtypeStruct((r, l_out), x.dtype),
        grid_spec=pltpu.PrefetchScalarGridSpec(
            num_scalar_prefetch=0,
            grid=grid,
            in_specs=in_specs,
            out_specs=out_specs,
        ),
        compiler_params=pltpu.CompilerParams(dimension_semantics=sem),
        cost_estimate=pl.CostEstimate(
            flops=0, transcendentals=0, bytes_accessed=int(bytes_accessed)
        ),
    )(x2)

    return out2.reshape(n, c, l_out)


if __name__ == "__main__":
    key = jax.random.PRNGKey(0)
    keys = jax.random.split(key, 5)

    # 1) Small demo shape (L, L_out both < 128 -> small-L fallback, full width).
    x = jax.random.normal(keys[0], (2, 4, 16), dtype=jnp.float32)
    out = jax.block_until_ready(chomp1d(x, 4))
    assert out.shape == (2, 4, 12)
    assert jnp.array_equal(out, x[:, :, :-4])

    # 2) Full-row fast path with ragged rows (R=15) and non-128-multiple L_out.
    x = jax.random.normal(keys[1], (3, 5, 300), dtype=jnp.float32)
    out = jax.block_until_ready(chomp1d(x, 13))
    assert out.shape == (3, 5, 287)
    assert jnp.array_equal(out, x[:, :, :-13])

    # 3) Tiled (rows, time) path: large chomp fraction rejects full-row variant;
    #    ragged time edge (440 = 384 + 56).
    x = jax.random.normal(keys[2], (2, 8, 640), dtype=jnp.float32)
    out = jax.block_until_ready(chomp1d(x, 200))
    assert out.shape == (2, 8, 440)
    assert jnp.array_equal(out, x[:, :, :-200])

    # 4) Small-L_out fallback with L >= 128 (input read capped at 128 lanes).
    x = jax.random.normal(keys[3], (2, 4, 256), dtype=jnp.float32)
    out = jax.block_until_ready(chomp1d(x, 200))
    assert out.shape == (2, 4, 56)
    assert jnp.array_equal(out, x[:, :, :-200])

    # 5) bf16: exercises dtype-aware sublane rounding (sub=16) on the tiled path.
    x = jax.random.normal(keys[4], (1, 20, 160), dtype=jnp.bfloat16)
    out = jax.block_until_ready(chomp1d(x, 32))
    assert out.shape == (1, 20, 128)
    assert jnp.array_equal(out, x[:, :, :-32])

    print("KERNEL_OK")
</pallas_src>

<mosaic_0001>
module attributes {stable_mosaic.version = 11 : i64} {
  func.func @_slice_kernel(%arg0: i32, %arg1: memref<8x16xf32, #tpu.memory_space<vmem>>, %arg2: memref<8x12xf32, #tpu.memory_space<vmem>>) attributes {dimension_semantics = [#tpu.dimension_semantics<parallel>], iteration_bounds = array<i64: 1>, scalar_prefetch = 0 : i64, scratch_operands = 0 : i64, tpu.core_type = #tpu.core_type<tc>, window_params = [{transform_indices = @transform_0, window_bounds = array<i64: 8, 16>}, {transform_indices = @transform_1, window_bounds = array<i64: 8, 12>}]} {
    %c0 = arith.constant 0 : index
    %c0_0 = arith.constant 0 : index
    %0 = vector.load %arg1[%c0, %c0_0] : memref<8x16xf32, #tpu.memory_space<vmem>>, vector<8x12xf32>
    %c0_1 = arith.constant 0 : index
    %c0_2 = arith.constant 0 : index
    %1 = vector.load %arg2[%c0_1, %c0_2] : memref<8x12xf32, #tpu.memory_space<vmem>>, vector<8x12xf32>
    tpu.vector_store %arg2[%c0_1, %c0_2], %0 {strides = array<i32>} : memref<8x12xf32, #tpu.memory_space<vmem>>, vector<8x12xf32>,
    return
  }
  func.func @transform_0(%arg0: i32) -> (i32, i32) {
    %c0_i32 = arith.constant 0 : i32
    %c0_i32_0 = arith.constant 0 : i32
    return %arg0, %c0_i32 : i32, i32
  }
  func.func @transform_1(%arg0: i32) -> (i32, i32) {
    %c0_i32 = arith.constant 0 : i32
    %c0_i32_0 = arith.constant 0 : i32
    return %arg0, %c0_i32 : i32, i32
  }
}

</mosaic_0001>

<bundles_post_ra>
// kernel: tpu_custom_call.1
= control target key start
LH: loop header
LB: loop body
LE: loop exit
PB: predicated region body
PF: predicated region fallthrough
CT: control target
= control target key end

     0   :  { %6 = vsyncpa [#allocation3], 0  ;;  %s115_s0 = inlined_call_operand.hbm [shape: f32[8,16], index: 0, kind: input, shape index: {}]   ;;  %s116_s1 = inlined_call_operand.hbm [shape: f32[8,12], index: 1, kind: output, shape index: {}]  }
   0x1   :  { %7 = vsyncpa [#allocation4], 0  ;;  %s13_s8 = sshll.u32 %s115_s0, 4  ;;  %s97_s9 = smov [#allocation2]   ;;  %s14_s8 = int_to_ptr.hbm [resolvable:$true] %s13_s8 }
   0x2   :  { %s15_s10 = sshll.u32 %s97_s9, 4  ;;  %s16_s10 = int_to_ptr.vmem [resolvable:$true] %s15_s10 }
   0x3   :  { %18 = dma.hbm_to_vmem [thread:$0]  %s14_s8, 128, %s16_s10, [#allocation3]  }
   0x4   :  { %93 = dma.done.wait [#allocation3], 128  }
   0x5   :  { %94 = vsyncadd [#allocation3], 4294967168  ;;  %s98_s11 = smov [#allocation5]   ;;  %s33_s15 = sshll.u32 %s116_s1, 4  ;;  %vm24_vm0 = vcmask 97280   ;;  %v23_v0 = vld [vmem:[#allocation2] sm:$0xff]  ;;  %s34_s15 = int_to_ptr.hbm [resolvable:$true] %s33_s15 }
   0x6   :  { %s31_s12 = sshll.u32 %s98_s11, 4  ;;  %25 = vst.msk [vmem:[#allocation5] sm:$0xff] %vm24_vm0, %v23_v0  ;;  %s32_s12 = int_to_ptr.vmem [resolvable:$true] %s31_s12 }
   0x7   :  { %36 = dma.vmem_to_hbm [thread:$0]  %s32_s12, 128, %s34_s15, [#allocation4]  }
   0x8   :  { %95 = dma.done.wait [#allocation4], 128  }
   0x9   :  { %96 = vsyncadd [#allocation4], 4294967168 }
   0xa   :  { %41 = vsyncpa [#allocation3], 1 }
   0xb   :  { %42 = vsyncpa [#allocation4], 1 }

</bundles_post_ra>
